<compile_context>
chip_gen: v7x
topology: tpu7x:2x2x1
jax: 0.10.0
libtpu: 0.0.40
codegen_flags: <defaults>
</compile_context>

<pallas_src>
import jax
import jax.numpy as jnp
from jax.experimental import pallas as pl
from jax.experimental.pallas import tpu as pltpu

D_IN1 = 16              # proj in_features
D_IN2 = 8               # projOther in_features
D_K = D_IN1 + D_IN2     # 24: merged contraction dim of the pre-concatenated weight
D_OUT = 32              # proj out_features (and adjusted projOther out_features)

# Batch tile: large enough to approach the HBM roofline, small enough (<~0.5 MiB
# double-buffered) to fit comfortably in VMEM on v5e/v6e/v7x.
MAX_TILE_B = 1024
# Below this batch the fixed per-call / per-grid-step overhead dwarfs the ~3 KFLOP of
# work; let XLA fuse the two tiny matmuls instead.
PALLAS_MIN_BATCH = 64


def _round_up(n: int, m: int) -> int:
    return ((n + m - 1) // m) * m


def _fused_linear_add_kernel(x1_ref, x2_ref, wt_ref, o_ref):
    """o = x1 @ W1^T + x2 @ W2^T.

    wt_ref holds the pre-transposed, pre-concatenated weight [[W1^T],[W2^T]] of shape
    (24, 32); it is sliced at 8-aligned sublane offsets (0 and 16), so both loads are
    plain aligned VMEM reads. Partial products accumulate in f32 on the MXU.
    """
    v1 = jnp.dot(x1_ref[...], wt_ref[:D_IN1, :], preferred_element_type=jnp.float32)
    v2 = jnp.dot(x2_ref[...], wt_ref[D_IN1:, :], preferred_element_type=jnp.float32)
    o_ref[...] = (v1 + v2).astype(o_ref.dtype)


@jax.jit
def _pallas_forward(x1, x2, w_cat_t):
    B = x1.shape[0]
    # Batch tile: multiple of 8 (sublane), capped at MAX_TILE_B; pad B to a whole
    # number of tiles (padded rows are zero and sliced off at the end).
    tile_b = min(MAX_TILE_B, _round_up(B, 8))
    B_pad = _round_up(B, tile_b)
    if B_pad != B:
        x1 = jnp.pad(x1, ((0, B_pad - B), (0, 0)))
        x2 = jnp.pad(x2, ((0, B_pad - B), (0, 0)))

    out = pl.pallas_call(
        _fused_linear_add_kernel,
        out_shape=jax.ShapeDtypeStruct((B_pad, D_OUT), x1.dtype),
        grid=(B_pad // tile_b,),
        in_specs=[
            pl.BlockSpec((tile_b, D_IN1), lambda i: (i, 0)),   # x1 tile (pipelined)
            pl.BlockSpec((tile_b, D_IN2), lambda i: (i, 0)),   # x2 tile (pipelined)
            pl.BlockSpec((D_K, D_OUT), lambda i: (0, 0)),      # weight: VMEM-resident
        ],
        out_specs=pl.BlockSpec((tile_b, D_OUT), lambda i: (i, 0)),
        compiler_params=pltpu.CompilerParams(
            # Batch tiles are independent -> shard across both TensorCores on v7x.
            dimension_semantics=("parallel",),
        ),
    )(x1, x2, w_cat_t)

    return out[:B] if B_pad != B else out


@jax.jit
def _xla_forward(x1, x2, w_cat_t):
    # Small-batch path: fused XLA HLO beats any kernel launch at this size.
    return x1 @ w_cat_t[:D_IN1, :] + x2 @ w_cat_t[D_IN1:, :]


class Model:
    """JAX/Pallas port of the PyTorch Model (bias-free Linears, deterministic init)."""

    def __init__(self, key):
        k1, k2 = jax.random.split(key)
        # torch.nn.Linear default init: U(-1/sqrt(fan_in), 1/sqrt(fan_in))
        b1 = 1.0 / (D_IN1 ** 0.5)
        b2 = 1.0 / (D_IN2 ** 0.5)
        # Stored PyTorch-style as [out_features, in_features].
        self.w_proj = jax.random.uniform(k1, (D_OUT, D_IN1), jnp.float32, -b1, b1)
        self.w_proj_other = jax.random.uniform(k2, (D_OUT, D_IN2), jnp.float32, -b2, b2)
        # Hoisted out of the forward: transpose + concatenate once -> [24, 32].
        self.w_cat_t = jnp.concatenate([self.w_proj.T, self.w_proj_other.T], axis=0)

    def __call__(self, x1, x2=None, *, use_pallas=None):
        if x2 is None:
            # TODO(synk): original x2=None branch computes proj(x1) + x1, i.e.
            # [B,32] + [B,16], which is shape-invalid in PyTorch; not implemented.
            raise NotImplementedError("x2=None branch is shape-invalid in the source module")
        if use_pallas is None:
            use_pallas = x1.shape[0] >= PALLAS_MIN_BATCH
        fwd = _pallas_forward if use_pallas else _xla_forward
        return fwd(x1, x2, self.w_cat_t)


if __name__ == "__main__":
    key = jax.random.PRNGKey(0)
    kx1, kx2, kx3, kx4, kp = jax.random.split(key, 5)

    model = Model(kp)

    # Small shapes consistent with the module (original fuzz inputs were batch=1).
    B_small = 2
    x1 = jax.random.normal(kx1, (B_small, D_IN1), dtype=jnp.float32)
    x2 = jax.random.normal(kx2, (B_small, D_IN2), dtype=jnp.float32)
    out = model(x1, x2, use_pallas=True)          # force the Pallas kernel path
    jax.block_until_ready(out)
    ref = x1 @ model.w_proj.T + x2 @ model.w_proj_other.T
    assert out.shape == (B_small, D_OUT)
    assert jnp.allclose(out, ref, atol=1e-5, rtol=1e-5), "small-batch mismatch vs reference"

    # A batch large enough to take the Pallas path by default (exercises tiling).
    B_big = 512
    x1b = jax.random.normal(kx3, (B_big, D_IN1), dtype=jnp.float32)
    x2b = jax.random.normal(kx4, (B_big, D_IN2), dtype=jnp.float32)
    outb = model(x1b, x2b)
    jax.block_until_ready(outb)
    refb = x1b @ model.w_proj.T + x2b @ model.w_proj_other.T
    assert outb.shape == (B_big, D_OUT)
    assert jnp.allclose(outb, refb, atol=1e-5, rtol=1e-5), "large-batch mismatch vs reference"

    print("KERNEL_OK")
</pallas_src>

<mosaic_0001>
module attributes {stable_mosaic.version = 11 : i64} {
  func.func @_fused_linear_add_kernel(%arg0: i32, %arg1: memref<8x16xf32, #tpu.memory_space<vmem>>, %arg2: memref<8x8xf32, #tpu.memory_space<vmem>>, %arg3: memref<24x32xf32, #tpu.memory_space<vmem>>, %arg4: memref<8x32xf32, #tpu.memory_space<vmem>>) attributes {dimension_semantics = [#tpu.dimension_semantics<parallel>], iteration_bounds = array<i64: 1>, scalar_prefetch = 0 : i64, scratch_operands = 0 : i64, tpu.core_type = #tpu.core_type<tc>, window_params = [{transform_indices = @transform_0, window_bounds = array<i64: 8, 16>}, {transform_indices = @transform_1, window_bounds = array<i64: 8, 8>}, {pipeline_mode = #tpu.pipeline_mode<synchronous>, transform_indices = @transform_2, window_bounds = array<i64: 24, 32>}, {transform_indices = @transform_3, window_bounds = array<i64: 8, 32>}]} {
    %c0 = arith.constant 0 : index
    %c0_0 = arith.constant 0 : index
    %0 = vector.load %arg1[%c0, %c0_0] : memref<8x16xf32, #tpu.memory_space<vmem>>, vector<8x16xf32>
    %c0_1 = arith.constant 0 : index
    %c0_2 = arith.constant 0 : index
    %1 = vector.load %arg3[%c0_1, %c0_2] : memref<24x32xf32, #tpu.memory_space<vmem>>, vector<16x32xf32>
    %cst = arith.constant dense<0.000000e+00> : vector<8x32xf32>
    %2 = tpu.matmul %0, %1, %cst {dimension_numbers = #tpu.dot_dimension_numbers<[1], [0], [0], [1], [0, 0, 1, 1], [], []>} : vector<8x16xf32>, vector<16x32xf32>, vector<8x32xf32> -> vector<8x32xf32>
    %c0_3 = arith.constant 0 : index
    %c0_4 = arith.constant 0 : index
    %3 = vector.load %arg2[%c0_3, %c0_4] : memref<8x8xf32, #tpu.memory_space<vmem>>, vector<8x8xf32>
    %c16 = arith.constant 16 : index
    %c0_5 = arith.constant 0 : index
    %4 = vector.load %arg3[%c16, %c0_5] : memref<24x32xf32, #tpu.memory_space<vmem>>, vector<8x32xf32>
    %cst_6 = arith.constant dense<0.000000e+00> : vector<8x32xf32>
    %5 = tpu.matmul %3, %4, %cst_6 {dimension_numbers = #tpu.dot_dimension_numbers<[1], [0], [0], [1], [0, 0, 1, 1], [], []>} : vector<8x8xf32>, vector<8x32xf32>, vector<8x32xf32> -> vector<8x32xf32>
    %6 = arith.addf %2, %5 : vector<8x32xf32>
    %c0_7 = arith.constant 0 : index
    %c0_8 = arith.constant 0 : index
    %7 = vector.load %arg4[%c0_7, %c0_8] : memref<8x32xf32, #tpu.memory_space<vmem>>, vector<8x32xf32>
    tpu.vector_store %arg4[%c0_7, %c0_8], %6 {strides = array<i32>} : memref<8x32xf32, #tpu.memory_space<vmem>>, vector<8x32xf32>,
    return
  }
  func.func @transform_0(%arg0: i32) -> (i32, i32) {
    %c0_i32 = arith.constant 0 : i32
    %c0_i32_0 = arith.constant 0 : i32
    return %arg0, %c0_i32 : i32, i32
  }
  func.func @transform_1(%arg0: i32) -> (i32, i32) {
    %c0_i32 = arith.constant 0 : i32
    %c0_i32_0 = arith.constant 0 : i32
    return %arg0, %c0_i32 : i32, i32
  }
  func.func @transform_2(%arg0: i32) -> (i32, i32) {
    %c0_i32 = arith.constant 0 : i32
    %c0_i32_0 = arith.constant 0 : i32
    %c0_i32_1 = arith.constant 0 : i32
    return %c0_i32, %c0_i32_0 : i32, i32
  }
  func.func @transform_3(%arg0: i32) -> (i32, i32) {
    %c0_i32 = arith.constant 0 : i32
    %c0_i32_0 = arith.constant 0 : i32
    return %arg0, %c0_i32 : i32, i32
  }
}

</mosaic_0001>

<bundles_post_ra>
// kernel: _pallas_forward.1
= control target key start
LH: loop header
LB: loop body
LE: loop exit
PB: predicated region body
PF: predicated region fallthrough
CT: control target
= control target key end

     0   :  { %vm19_vm0 = vcmask 64512   ;;  %v199_v0 = vmov 0.0|0.0   ;;  %v200_v1 = vmov 0.0   ;;  %vm201_vm1 = vmmov 0   ;;  %s240_s2 = inlined_call_operand.vmem [shape: f32[24,32], index: 2, kind: input, shape index: {}]   ;;  %s241_s1 = inlined_call_operand.vmem [shape: f32[8,8], index: 1, kind: input, shape index: {}]   ;;  %s242_s0 = inlined_call_operand.vmem [shape: f32[8,16], index: 0, kind: input, shape index: {}]   ;;  %s243_s3 = inlined_call_operand.vmem [shape: f32[8,32], index: 3, kind: output, shape index: {}]  }
   0x1   :  { %192 = vmatprep.subr.bf16.mxu0 %v199_v0  ;;  %180 = vmatprep.subr.mxu1 %v200_v1  ;;  %v15_v2 = vld [vmem:[%s240_s2] sm:$0xff]  ;;  %v16_v3 = vld [vmem:[%s240_s2 + $0x8] sm:$0xff]  ;;  %v18_v4 = vld [vmem:[%s240_s2 + $0x10] sm:$0xff]  ;;  %vm93_vm2 = vcmask 130048   ;;  %vm167_vm3 = vcmask 261120  }
   0x2   :  { %v193_v5 = vpack.c.bf16 %v16_v3, %v15_v2  ;;  %181 = vmatpush3.msra.mxu1 %v18_v4  ;;  %182 = vmatprep.mubr.msk.f32.mxu1 %vm201_vm1, %v200_v1  ;;  %v17_v6 = vld [vmem:[%s241_s1] sm:$0xff] }
   0x3   :  { %183 = vmatmul.mubr.msk.f32.vlgmr.msra.gmra.mrb[0].mxu1 %vm19_vm0, %v17_v6  ;;  %189 = vmatprep.mubr.msk.f32.mxu0 %vm201_vm1, %v200_v1  ;;  %v14_v7 = vld [vmem:[%s242_s0] sm:$0xff] }
   0x4   :  { %194 = vmatpush3.bf16.msra.mxu0 %v193_v5 }
   0x7   :  { %190 = vmatmul.mubr.msk.f32.vlgmr.msra.gmra.mrb[0].mxu0 %vm93_vm2, %v14_v7 }
  0xd6   :  { %v89_v8 = vpop.f32.mrb[0].mxu1 }
  0xd7   :  { %v184_v9 = vpop.f32.mrb[1].mxu1 }
  0xda   :  { %v163_v10 = vpop.f32.mrb[0].mxu0 }
  0xdb   :  { %v164_v11 = vadd.f32 %v163_v10, %v89_v8  ;;  %v191_v12 = vpop.f32.mrb[1].mxu0 }
  0xdd   :  { %168 = vst.msk [vmem:[%s243_s3] sm:$0xff] %vm167_vm3, %v164_v11 }

</bundles_post_ra>
